<compile_context>
chip_gen: v7x
topology: tpu7x:2x2x1
jax: 0.10.0
libtpu: 0.0.40
codegen_flags: <defaults>
</compile_context>

<pallas_src>
import functools

import numpy as np
import jax
import jax.numpy as jnp
from jax import lax
from jax.experimental import pallas as pl
from jax.experimental.pallas import tpu as pltpu


def _round_up(x, m):
    return ((x + m - 1) // m) * m


# ----------------------------------------------------------------------------
# Trace-time constant matrices (numpy -> baked into the jitted graph)
# ----------------------------------------------------------------------------
def _pool3x3_matrix(n):
    """(n, n) band matrix of ones on |i-j|<=1: one axis of a 3x3 sum w/ zero pad."""
    idx = np.arange(n)
    return (np.abs(idx[:, None] - idx[None, :]) <= 1).astype(np.float32)


def _bilinear_matrix(out_size, in_size):
    """(out_size, in_size) matrix matching F.interpolate(mode='bilinear',
    align_corners=False)."""
    if in_size == 1:
        return np.ones((out_size, 1), np.float32)
    scale = in_size / out_size
    dst = np.arange(out_size, dtype=np.float64)
    src = np.maximum((dst + 0.5) * scale - 0.5, 0.0)
    i0 = np.clip(np.floor(src).astype(np.int64), 0, in_size - 1)
    i1 = np.clip(i0 + 1, 0, in_size - 1)
    w1 = (src - i0).astype(np.float32)
    w0 = 1.0 - w1
    mat = np.zeros((out_size, in_size), np.float32)
    rows = np.arange(out_size)
    np.add.at(mat, (rows, i0), w0)
    np.add.at(mat, (rows, i1), w1)
    return mat


def _coord_channels(height, width):
    """AddCoords channels, shape (2, H*W): row 0 = xx (varies with row index),
    row 1 = yy (varies with col index), each mapped to [-1, 1]."""
    # max(.,1) guards H==1 / W==1 (PyTorch AddCoords would divide by zero there).
    xx = 2.0 * np.arange(height, dtype=np.float32) / max(height - 1, 1) - 1.0
    yy = 2.0 * np.arange(width, dtype=np.float32) / max(width - 1, 1) - 1.0
    xx_map = np.broadcast_to(xx[:, None], (height, width))
    yy_map = np.broadcast_to(yy[None, :], (height, width))
    return np.stack([xx_map.reshape(-1), yy_map.reshape(-1)], axis=0)


# ----------------------------------------------------------------------------
# Fused Descriptor kernel: one grid step per (batch element, H*W column block)
# ----------------------------------------------------------------------------
def _make_descriptor_kernel(w_col_slices, g_col_offsets, g_pad_ranges):
    num_features = len(w_col_slices)

    def kernel(*refs):
        feat_refs = refs[:num_features]          # (1, C_k, h_k*w_k) bf16 each
        w_ref = refs[num_features]               # (Npad, Wcols)  bf16 (merged)
        kron_ref = refs[num_features + 1]        # (Kpad, HWblk)  bf16 (merged)
        cb_ref = refs[num_features + 2]          # (Npad, HWblk)  f32  coords+bias
        o_ref = refs[num_features + 3]           # (1, Npad, HWblk) f32
        g_ref = refs[num_features + 4]           # scratch (Npad, Kpad) bf16

        # Zero the padded K columns of G. Their kron rows are zero too, but
        # uninitialized VMEM could hold NaN/Inf and NaN * 0 = NaN.
        for lo, hi in g_pad_ranges:
            g_ref[:, lo:hi] = jnp.zeros((g_ref.shape[0], hi - lo), g_ref.dtype)

        # Per-feature 1x1-conv channel contraction at native resolution,
        # written to 128-aligned column offsets of G (bf16, f32 accumulation).
        for k in range(num_features):
            c_lo, c_hi = w_col_slices[k]
            g = jnp.dot(w_ref[:, c_lo:c_hi], feat_refs[k][0],
                        preferred_element_type=jnp.float32)
            off = g_col_offsets[k]
            g_ref[:, off:off + g.shape[1]] = g.astype(g_ref.dtype)

        # Single fused spatial matmul (pool + all bilinear resizes at once);
        # accumulation stays in the MXU. One VPU add for the coord/bias term.
        acc = jnp.dot(g_ref[...], kron_ref[...],
                      preferred_element_type=jnp.float32)
        o_ref[0] = acc + cb_ref[...]

    return kernel


@functools.partial(jax.jit, static_argnames=("backbone",))
def descriptor_forward(features, weight, bias, backbone="resnet18"):
    """features: list of NCHW arrays (any float dtype; used as bf16 in matmuls).
    weight: (dim+2, Cout) 1x1 CoordConv weight, rows ordered [features..., xx, yy].
    bias: (Cout,). Returns (B, Cout, H, W) float32."""
    batch, _, height, width = features[0].shape
    hw = height * width
    n_out = weight.shape[1]
    dim = weight.shape[0] - 2
    n_pad = _round_up(n_out, 8)                  # sublane-align output channels

    channel_counts = [int(f.shape[1]) for f in features]
    if sum(channel_counts) != dim:
        raise ValueError(
            f"feature channels sum to {sum(channel_counts)}, expected {dim}")
    hw_list = [int(f.shape[2]) * int(f.shape[3]) for f in features]

    # H*W column split so both v7x TensorCores work even at batch == 1.
    col_block = hw // 2 if (hw % 256 == 0) else hw
    n_col_blocks = hw // col_block

    # --- merged 1x1-conv weight (Npad, Wcols), segments at 128-aligned offsets,
    #     pool scale (1/9, and /C for efficientnet_b5) folded into segment 0.
    w_col_slices, w_cols = [], 0
    for c in channel_counts:
        w_col_slices.append((w_cols, w_cols + c))
        w_cols = _round_up(w_cols + c, 128)
    w_col_slices = tuple(w_col_slices)

    w_all = jnp.zeros((n_pad, w_cols), jnp.float32)
    ch_off = 0
    for k, c in enumerate(channel_counts):
        scale = 1.0
        if k == 0:
            scale = 1.0 / 9.0
            if backbone == "efficientnet_b5":
                scale = scale / c
        w_seg = weight[ch_off:ch_off + c, :].astype(jnp.float32).T * scale
        lo, hi = w_col_slices[k]
        w_all = w_all.at[:n_out, lo:hi].set(w_seg)
        ch_off += c
    w_all = w_all.astype(jnp.bfloat16)

    # --- merged spatial (Kronecker) operator (Kpad, H*W), bf16-exact entries.
    g_col_offsets, k_cols = [], 0
    for s in hw_list:
        g_col_offsets.append(k_cols)
        k_cols = _round_up(k_cols + s, 128)
    k_pad = k_cols
    g_col_offsets = tuple(g_col_offsets)

    kron_cat = np.zeros((k_pad, hw), np.float32)
    for k, feat in enumerate(features):
        h_k, w_k = int(feat.shape[2]), int(feat.shape[3])
        if k == 0:
            kh, kw = _pool3x3_matrix(height), _pool3x3_matrix(width)
        else:
            # NOTE: assumes square targets like anomalib (interpolate to (H, W)).
            kh, kw = _bilinear_matrix(height, h_k), _bilinear_matrix(width, w_k)
        kron = np.kron(kh, kw).astype(np.float32)          # (H*W, h_k*w_k)
        off = g_col_offsets[k]
        kron_cat[off:off + h_k * w_k, :] = kron.T
    kron_cat = jnp.asarray(kron_cat, dtype=jnp.bfloat16)

    g_pad_ranges = []
    for k, s in enumerate(hw_list):
        lo = g_col_offsets[k] + s
        hi = g_col_offsets[k + 1] if k + 1 < len(hw_list) else k_pad
        if hi > lo:
            g_pad_ranges.append((lo, hi))
    g_pad_ranges = tuple(g_pad_ranges)

    # --- fold AddCoords + bias into a per-pixel additive f32 term (Npad, H*W).
    coords = jnp.asarray(_coord_channels(height, width))        # (2, H*W)
    w_coord = weight[dim:dim + 2, :].astype(jnp.float32)        # (2, Cout)
    cb = jnp.dot(w_coord.T, coords, precision=lax.Precision.HIGHEST)
    cb = cb + bias.astype(jnp.float32)[:, None]                 # (Cout, H*W)
    cb = jnp.zeros((n_pad, hw), jnp.float32).at[:n_out, :].set(cb)

    # --- features flattened to (B, C_k, h_k*w_k), matmul operands in bf16
    #     (no f32 upcast in HBM; halves the only per-step streaming DMA).
    feats_flat = [
        f.reshape(f.shape[0], f.shape[1], -1).astype(jnp.bfloat16)
        for f in features
    ]

    num_features = len(features)
    in_specs = (
        [pl.BlockSpec((1,) + f.shape[1:], lambda b, j: (b, 0, 0))
         for f in feats_flat]
        + [pl.BlockSpec((n_pad, w_cols), lambda b, j: (0, 0)),
           pl.BlockSpec((k_pad, col_block), lambda b, j: (0, j)),
           pl.BlockSpec((n_pad, col_block), lambda b, j: (0, j))]
    )
    out_spec = pl.BlockSpec((1, n_pad, col_block), lambda b, j: (b, 0, j))

    flops = 2 * batch * n_col_blocks * (
        sum(n_pad * c * s for c, s in zip(channel_counts, hw_list))
        + n_pad * k_pad * col_block)
    bytes_accessed = (
        batch * sum(c * s for c, s in zip(channel_counts, hw_list)) * 2
        + n_pad * w_cols * 2 + k_pad * hw * 2 + n_pad * hw * 4
        + batch * n_pad * hw * 4)
    cost = pl.CostEstimate(flops=int(flops), transcendentals=0,
                           bytes_accessed=int(bytes_accessed))

    out = pl.pallas_call(
        _make_descriptor_kernel(w_col_slices, g_col_offsets, g_pad_ranges),
        out_shape=jax.ShapeDtypeStruct((batch, n_pad, hw), jnp.float32),
        grid=(batch, n_col_blocks),
        in_specs=in_specs,
        out_specs=out_spec,
        scratch_shapes=[pltpu.VMEM((n_pad, k_pad), jnp.bfloat16)],
        compiler_params=pltpu.CompilerParams(
            dimension_semantics=("parallel", "parallel")),
        cost_estimate=cost,
    )(*feats_flat, w_all, kron_cat, cb)

    return out.reshape(batch, n_pad, height, width)[:, :n_out]


# ----------------------------------------------------------------------------
# Pure-JAX f32 reference following the PyTorch module step by step
# ----------------------------------------------------------------------------
def descriptor_reference(features, weight, bias, backbone="resnet18"):
    patch = None
    for feat in features:
        x = feat.astype(jnp.float32)
        if patch is None:
            s = lax.reduce_window(x, 0.0, lax.add, (1, 1, 3, 3), (1, 1, 1, 1),
                                  [(0, 0), (0, 0), (1, 1), (1, 1)])
            pooled = s / 9.0
            if backbone == "efficientnet_b5":
                pooled = pooled / feat.shape[1]
            patch = pooled
        else:
            height, width = patch.shape[2], patch.shape[3]
            rh = jnp.asarray(_bilinear_matrix(height, feat.shape[2]))
            rw = jnp.asarray(_bilinear_matrix(width, feat.shape[3]))
            resized = jnp.einsum("Hh,bchw,Ww->bcHW", rh, x, rw,
                                 precision=lax.Precision.HIGHEST)
            patch = jnp.concatenate([patch, resized], axis=1)
    batch, _, height, width = patch.shape
    coords = jnp.asarray(_coord_channels(height, width)).reshape(2, height, width)
    coords = jnp.broadcast_to(coords[None], (batch, 2, height, width))
    aug = jnp.concatenate([patch, coords], axis=1)               # (B, dim+2, H, W)
    out = jnp.einsum("bkhw,kn->bnhw", aug, weight.astype(jnp.float32),
                     precision=lax.Precision.HIGHEST)
    return out + bias.astype(jnp.float32)[None, :, None, None]


if __name__ == "__main__":
    backbone = "resnet18"
    gamma_d = 8
    dim = 448                               # resnet18: 64 + 128 + 256
    out_channels = dim // gamma_d           # 56

    batch = 2
    key = jax.random.PRNGKey(0)
    k1, k2, k3, kw, kb = jax.random.split(key, 5)
    # Synthetic multi-scale backbone features (NCHW), channels sum to `dim`.
    features = [
        jax.random.normal(k1, (batch, 64, 16, 16), dtype=jnp.float32),
        jax.random.normal(k2, (batch, 128, 8, 8), dtype=jnp.float32),
        jax.random.normal(k3, (batch, 256, 4, 4), dtype=jnp.float32),
    ]
    # 1x1 CoordConv parameters: weight (dim+2, Cout), bias (Cout,)
    weight = jax.random.normal(kw, (dim + 2, out_channels), dtype=jnp.float32) * 0.05
    bias = jax.random.normal(kb, (out_channels,), dtype=jnp.float32) * 0.05

    out = jax.block_until_ready(
        descriptor_forward(features, weight, bias, backbone=backbone))
    assert out.shape == (batch, out_channels, 16, 16), out.shape

    ref = jax.block_until_ready(
        descriptor_reference(features, weight, bias, backbone=backbone))
    max_err = float(jnp.max(jnp.abs(out - ref)))
    # Tolerance sized for bf16 matmul operands (f32 accumulation): operand
    # rounding ~2^-9 accumulated over up to 448 channel terms on O(1) values.
    assert jnp.isfinite(out).all()
    assert jnp.allclose(out, ref, atol=2e-2, rtol=2e-2), max_err

    print("KERNEL_OK")
</pallas_src>

<mosaic_0001>
module attributes {stable_mosaic.version = 11 : i64} {
  func.func @kernel(%arg0: i32, %arg1: i32, %arg2: memref<1x64x256xbf16, #tpu.memory_space<vmem>>, %arg3: memref<1x128x64xbf16, #tpu.memory_space<vmem>>, %arg4: memref<1x256x16xbf16, #tpu.memory_space<vmem>>, %arg5: memref<56x512xbf16, #tpu.memory_space<vmem>>, %arg6: memref<512x128xbf16, #tpu.memory_space<vmem>>, %arg7: memref<56x128xf32, #tpu.memory_space<vmem>>, %arg8: memref<1x56x128xf32, #tpu.memory_space<vmem>>, %arg9: memref<56x512xbf16, #tpu.memory_space<vmem>>) attributes {dimension_semantics = [#tpu.dimension_semantics<parallel>, #tpu.dimension_semantics<parallel>], iteration_bounds = array<i64: 2, 2>, scalar_prefetch = 0 : i64, scratch_operands = 1 : i64, tpu.core_type = #tpu.core_type<tc>, window_params = [{transform_indices = @transform_0, window_bounds = array<i64: 1, 64, 256>}, {transform_indices = @transform_1, window_bounds = array<i64: 1, 128, 64>}, {transform_indices = @transform_2, window_bounds = array<i64: 1, 256, 16>}, {pipeline_mode = #tpu.pipeline_mode<synchronous>, transform_indices = @transform_3, window_bounds = array<i64: 56, 512>}, {transform_indices = @transform_4, window_bounds = array<i64: 512, 128>}, {transform_indices = @transform_5, window_bounds = array<i64: 56, 128>}, {transform_indices = @transform_6, window_bounds = array<i64: 1, 56, 128>}]} {
    %cst = arith.constant 0.000000e+00 : bf16
    %0 = vector.broadcast %cst : bf16 to vector<56x64xbf16>
    %c0 = arith.constant 0 : index
    %c320 = arith.constant 320 : index
    %1 = vector.load %arg9[%c0, %c320] : memref<56x512xbf16, #tpu.memory_space<vmem>>, vector<56x64xbf16>
    tpu.vector_store %arg9[%c0, %c320], %0 {strides = array<i32>} : memref<56x512xbf16, #tpu.memory_space<vmem>>, vector<56x64xbf16>,
    %cst_0 = arith.constant 0.000000e+00 : bf16
    %2 = vector.broadcast %cst_0 : bf16 to vector<56x112xbf16>
    %c0_1 = arith.constant 0 : index
    %c400 = arith.constant 400 : index
    %3 = vector.load %arg9[%c0_1, %c400] : memref<56x512xbf16, #tpu.memory_space<vmem>>, vector<56x112xbf16>
    tpu.vector_store %arg9[%c0_1, %c400], %2 {strides = array<i32>} : memref<56x512xbf16, #tpu.memory_space<vmem>>, vector<56x112xbf16>,
    %c0_2 = arith.constant 0 : index
    %c0_3 = arith.constant 0 : index
    %4 = vector.load %arg5[%c0_2, %c0_3] : memref<56x512xbf16, #tpu.memory_space<vmem>>, vector<56x64xbf16>
    %c0_4 = arith.constant 0 : index
    %c0_5 = arith.constant 0 : index
    %c0_6 = arith.constant 0 : index
    %5 = vector.load %arg2[%c0_4, %c0_5, %c0_6] : memref<1x64x256xbf16, #tpu.memory_space<vmem>>, vector<1x64x256xbf16>
    %6 = vector.shape_cast %5 : vector<1x64x256xbf16> to vector<64x256xbf16>
    %cst_7 = arith.constant dense<0.000000e+00> : vector<56x256xf32>
    %7 = tpu.matmul %4, %6, %cst_7 {dimension_numbers = #tpu.dot_dimension_numbers<[1], [0], [0], [1], [0, 0, 1, 1], [], []>} : vector<56x64xbf16>, vector<64x256xbf16>, vector<56x256xf32> -> vector<56x256xf32>
    %8 = arith.truncf %7 : vector<56x256xf32> to vector<56x256xbf16>
    %c0_8 = arith.constant 0 : index
    %c0_9 = arith.constant 0 : index
    %9 = vector.load %arg9[%c0_8, %c0_9] : memref<56x512xbf16, #tpu.memory_space<vmem>>, vector<56x256xbf16>
    tpu.vector_store %arg9[%c0_8, %c0_9], %8 {strides = array<i32>} : memref<56x512xbf16, #tpu.memory_space<vmem>>, vector<56x256xbf16>,
    %c0_10 = arith.constant 0 : index
    %c128 = arith.constant 128 : index
    %10 = vector.load %arg5[%c0_10, %c128] : memref<56x512xbf16, #tpu.memory_space<vmem>>, vector<56x128xbf16>
    %c0_11 = arith.constant 0 : index
    %c0_12 = arith.constant 0 : index
    %c0_13 = arith.constant 0 : index
    %11 = vector.load %arg3[%c0_11, %c0_12, %c0_13] : memref<1x128x64xbf16, #tpu.memory_space<vmem>>, vector<1x128x64xbf16>
    %12 = vector.shape_cast %11 : vector<1x128x64xbf16> to vector<128x64xbf16>
    %cst_14 = arith.constant dense<0.000000e+00> : vector<56x64xf32>
    %13 = tpu.matmul %10, %12, %cst_14 {dimension_numbers = #tpu.dot_dimension_numbers<[1], [0], [0], [1], [0, 0, 1, 1], [], []>} : vector<56x128xbf16>, vector<128x64xbf16>, vector<56x64xf32> -> vector<56x64xf32>
    %14 = arith.truncf %13 : vector<56x64xf32> to vector<56x64xbf16>
    %c0_15 = arith.constant 0 : index
    %c256 = arith.constant 256 : index
    %15 = vector.load %arg9[%c0_15, %c256] : memref<56x512xbf16, #tpu.memory_space<vmem>>, vector<56x64xbf16>
    tpu.vector_store %arg9[%c0_15, %c256], %14 {strides = array<i32>} : memref<56x512xbf16, #tpu.memory_space<vmem>>, vector<56x64xbf16>,
    %c0_16 = arith.constant 0 : index
    %c256_17 = arith.constant 256 : index
    %16 = vector.load %arg5[%c0_16, %c256_17] : memref<56x512xbf16, #tpu.memory_space<vmem>>, vector<56x256xbf16>
    %c0_18 = arith.constant 0 : index
    %c0_19 = arith.constant 0 : index
    %c0_20 = arith.constant 0 : index
    %17 = vector.load %arg4[%c0_18, %c0_19, %c0_20] : memref<1x256x16xbf16, #tpu.memory_space<vmem>>, vector<1x256x16xbf16>
    %18 = vector.shape_cast %17 : vector<1x256x16xbf16> to vector<256x16xbf16>
    %cst_21 = arith.constant dense<0.000000e+00> : vector<56x16xf32>
    %19 = tpu.matmul %16, %18, %cst_21 {dimension_numbers = #tpu.dot_dimension_numbers<[1], [0], [0], [1], [0, 0, 1, 1], [], []>} : vector<56x256xbf16>, vector<256x16xbf16>, vector<56x16xf32> -> vector<56x16xf32>
    %20 = arith.truncf %19 : vector<56x16xf32> to vector<56x16xbf16>
    %c0_22 = arith.constant 0 : index
    %c384 = arith.constant 384 : index
    %21 = vector.load %arg9[%c0_22, %c384] : memref<56x512xbf16, #tpu.memory_space<vmem>>, vector<56x16xbf16>
    tpu.vector_store %arg9[%c0_22, %c384], %20 {strides = array<i32>} : memref<56x512xbf16, #tpu.memory_space<vmem>>, vector<56x16xbf16>,
    %c0_23 = arith.constant 0 : index
    %c0_24 = arith.constant 0 : index
    %22 = vector.load %arg9[%c0_23, %c0_24] : memref<56x512xbf16, #tpu.memory_space<vmem>>, vector<56x512xbf16>
    %c0_25 = arith.constant 0 : index
    %c0_26 = arith.constant 0 : index
    %23 = vector.load %arg6[%c0_25, %c0_26] : memref<512x128xbf16, #tpu.memory_space<vmem>>, vector<512x128xbf16>
    %cst_27 = arith.constant dense<0.000000e+00> : vector<56x128xf32>
    %24 = tpu.matmul %22, %23, %cst_27 {dimension_numbers = #tpu.dot_dimension_numbers<[1], [0], [0], [1], [0, 0, 1, 1], [], []>} : vector<56x512xbf16>, vector<512x128xbf16>, vector<56x128xf32> -> vector<56x128xf32>
    %c0_28 = arith.constant 0 : index
    %c0_29 = arith.constant 0 : index
    %25 = vector.load %arg7[%c0_28, %c0_29] : memref<56x128xf32, #tpu.memory_space<vmem>>, vector<56x128xf32>
    %26 = arith.addf %24, %25 : vector<56x128xf32>
    %c0_30 = arith.constant 0 : index
    %c0_31 = arith.constant 0 : index
    %c0_32 = arith.constant 0 : index
    %27 = vector.load %arg8[%c0_30, %c0_31, %c0_32] : memref<1x56x128xf32, #tpu.memory_space<vmem>>, vector<1x56x128xf32>
    %28 = vector.shape_cast %27 : vector<1x56x128xf32> to vector<56x128xf32>
    %29 = vector.shape_cast %26 : vector<56x128xf32> to vector<1x56x128xf32>
    tpu.vector_store %arg8[%c0_30, %c0_31, %c0_32], %29 {strides = array<i32>} : memref<1x56x128xf32, #tpu.memory_space<vmem>>, vector<1x56x128xf32>,
    return
  }
  func.func @transform_0(%arg0: i32, %arg1: i32) -> (i32, i32, i32) {
    %c0_i32 = arith.constant 0 : i32
    %c0_i32_0 = arith.constant 0 : i32
    %c0_i32_1 = arith.constant 0 : i32
    return %arg0, %c0_i32, %c0_i32_0 : i32, i32, i32
  }
  func.func @transform_1(%arg0: i32, %arg1: i32) -> (i32, i32, i32) {
    %c0_i32 = arith.constant 0 : i32
    %c0_i32_0 = arith.constant 0 : i32
    %c0_i32_1 = arith.constant 0 : i32
    return %arg0, %c0_i32, %c0_i32_0 : i32, i32, i32
  }
  func.func @transform_2(%arg0: i32, %arg1: i32) -> (i32, i32, i32) {
    %c0_i32 = arith.constant 0 : i32
    %c0_i32_0 = arith.constant 0 : i32
    %c0_i32_1 = arith.constant 0 : i32
    return %arg0, %c0_i32, %c0_i32_0 : i32, i32, i32
  }
  func.func @transform_3(%arg0: i32, %arg1: i32) -> (i32, i32) {
    %c0_i32 = arith.constant 0 : i32
    %c0_i32_0 = arith.constant 0 : i32
    %c0_i32_1 = arith.constant 0 : i32
    return %c0_i32, %c0_i32_0 : i32, i32
  }
  func.func @transform_4(%arg0: i32, %arg1: i32) -> (i32, i32) {
    %c0_i32 = arith.constant 0 : i32
    %c0_i32_0 = arith.constant 0 : i32
    return %c0_i32, %arg1 : i32, i32
  }
  func.func @transform_5(%arg0: i32, %arg1: i32) -> (i32, i32) {
    %c0_i32 = arith.constant 0 : i32
    %c0_i32_0 = arith.constant 0 : i32
    return %c0_i32, %arg1 : i32, i32
  }
  func.func @transform_6(%arg0: i32, %arg1: i32) -> (i32, i32, i32) {
    %c0_i32 = arith.constant 0 : i32
    %c0_i32_0 = arith.constant 0 : i32
    return %arg0, %c0_i32, %arg1 : i32, i32, i32
  }
}

</mosaic_0001>

<bundles_post_ra>
// kernel: descriptor_forward.1
= control target key start
LH: loop header
LB: loop body
LE: loop exit
PB: predicated region body
PF: predicated region fallthrough
CT: control target
= control target key end

     0   :  { %s3148_s0 = inlined_call_operand.vmem [shape: bf16[2,64,256], index: 0, kind: input, shape index: {}]   ;;  %s3149_s1 = inlined_call_operand.vmem [shape: bf16[2,128,64], index: 1, kind: input, shape index: {}]   ;;  %s3150_s2 = inlined_call_operand.vmem [shape: bf16[2,256,16], index: 2, kind: input, shape index: {}]   ;;  %s3151_s3 = inlined_call_operand.vmem [shape: bf16[56,512], index: 3, kind: input, shape index: {}]   ;;  %s3152_s4 = inlined_call_operand.vmem [shape: bf16[512,256], index: 4, kind: input, shape index: {}]   ;;  %s3153_s5 = inlined_call_operand.vmem [shape: f32[56,256], index: 5, kind: input, shape index: {}]   ;;  %s3154_s6 = inlined_call_operand.vmem [shape: f32[2,56,256], index: 6, kind: output, shape index: {}]  }
   0x1   :  { %3155 = sst [smem:[#allocation6_spill]] %s3152_s4 }
   0x2   :  { %s2686_s21 = smov 0   ;;  %s2688_s22 = smov 0  }
   0x3   :  { %s2690_s23 = smov 0   ;;  %s2692_s24 = smov 0  }
   0x4   :  { %s2694_s25 = smov 0   ;;  %s2696_s26 = smov 0  }
   0x5   :  { %s2698_s27 = smov 0   ;;  %s2700_s28 = smov 0  }
   0x6   :  { %s2702_s29 = smov 0  }
   0x7 LB: > { %s2060_s30 = sadd.s32 4294967295, %s2648_s29   ;;  %s25_s7 = sadd.s32 1, %s2640_s27  ;;  %s2648_s29 = sphi %s2702_s29, %s16_s29   ;;  %s2644_s28 = sphi %s2700_s28, %s3166_s28   ;;  %s2640_s27 = sphi %s2698_s27, %s3165_s27   ;;  %s2636_s26 = sphi %s2696_s26, %s3164_s26   ;;  %s2632_s25 = sphi %s2694_s25, %s3163_s25   ;;  %s2628_s24 = sphi %s2692_s24, %s3162_s24   ;;  %s2624_s23 = sphi %s2690_s23, %s3161_s23   ;;  %s2620_s22 = sphi %s2688_s22, %s3160_s22   ;;  %s2616_s21 = sphi %s2686_s21, %s3159_s21  }
   0x8   : > { %p26_p0 = scmp.ge.s32.totalorder %s25_s7, 2  ;;  %s28_s8 = sadd.s32 1, %s2644_s28 }
   0x9   : > { %s134_s9 = sadd.s32 1, %s2628_s24  ;;  %p141_p1 = scmp.ne.s32.totalorder %s2628_s24, %s2624_s23 }
   0xa   : > { %s3168_s7 = smov (%p26_p0, %s25_s7), 0  ;;  %s3170_s8 = smov (!%p26_p0, %s28_s8), %s2644_s28 }
   0xb   : > { %s131_s10 = ssub.s32 %s2640_s27, %s3168_s7  ;;  %p142_p2 = scmp.eq.s32.totalorder %s2648_s29, 0 }
   0xc   : > { %p30_p3 = scmp.ge.s32.totalorder %s3170_s8, 2  ;;  %p132_p4 = scmp.eq.s32.totalorder %s131_s10, 0 }
   0xd   : > { %p2743_p5 = por %p142_p2, %p141_p1  ;;  %s188_s12 = sadd.s32 1, %s2620_s22 }
   0xe   : > { %s3172_s8 = smov (%p30_p3, %s3170_s8), 0  ;;  %p198_p6 = scmp.ne.s32.totalorder %s2620_s22, %s2616_s21 }
   0xf   : > { %s2751_s13 = scalar_select %p132_p4, %s2628_s24, %s134_s9  }
  0x10   : > { %s183_s14 = ssub.s32 %s2644_s28, %s3172_s8  ;;  %p199_p7 = scmp.eq.s32.totalorder %s2060_s30, 3 }
  0x11   : > { %s185_s15 = sor.u32 %s183_s14, %s131_s10  ;;  %p2063_p10 = scmp.ge.s32.totalorder %s2648_s29, 4 }
  0x12   : > { %p186_p8 = scmp.eq.s32.totalorder %s185_s15, 0  ;;  %p2757_p9 = por %p199_p7, %p198_p6 }
  0x13   : > { %224 = sbr.rel (%p2063_p10) target bundleno = 86 (0x56), region = 20 }
  0x14   : > { %s2762_s17 = scalar_select %p186_p8, %s2620_s22, %s188_s12  }
  0x1a   : > { %251 = sbr.rel (!%p2743_p5) target bundleno = 78 (0x4e), region = 36  ;;  %s253_s18 = sand.u32 (%p2743_p5), 1, %s2628_s24  }
  0x1b   : > { %s2065_s19 = sshll.u32 (%p2743_p5), %s2640_s27, 2  ;;  %s2064_s20 = sshll.u32 (%p2743_p5), %s253_s18, 8 }
  0x1c   : > { %s3158_s4 = sld [smem:[#allocation6_spill]] (%p2743_p5)  ;;  %s2776_s12 = scalar_lea.vmem (%p2743_p5), [#allocation3], %s2064_s20 }
  0x22   : > { %s2772_s10 = scalar_lea.vmem %s3158_s4, %s2065_s19 }
  0x23   : > { %v273_v0 = vld [vmem:[%s2772_s10] sm:$0xf]  ;;  %v275_v1 = vld [vmem:[%s2772_s10 + $0x8] sm:$0xf]  ;;  %v277_v2 = vld [vmem:[%s2772_s10 + $0x10] sm:$0xf] }
  0x24   : > { %274 = vst [vmem:[%s2776_s12] sm:$0xf] %v273_v0  ;;  %276 = vst [vmem:[%s2776_s12 + $0x4] sm:$0xf] %v275_v1  ;;  %v279_v3 = vld [vmem:[%s2772_s10 + $0x18] sm:$0xf] }
  0x25   : > { %v281_v4 = vld [vmem:[%s2772_s10 + $0x20] sm:$0xf]  ;;  %278 = vst [vmem:[%s2776_s12 + $0x8] sm:$0xf] %v277_v2  ;;  %280 = vst [vmem:[%s2776_s12 + $0xc] sm:$0xf] %v279_v3 }
  0x26   : > { %282 = vst [vmem:[%s2776_s12 + $0x10] sm:$0xf] %v281_v4  ;;  %v283_v5 = vld [vmem:[%s2772_s10 + $0x28] sm:$0xf]  ;;  %v285_v6 = vld [vmem:[%s2772_s10 + $0x30] sm:$0xf] }
  0x27   : > { %v287_v7 = vld [vmem:[%s2772_s10 + $0x38] sm:$0xf]  ;;  %284 = vst [vmem:[%s2776_s12 + $0x14] sm:$0xf] %v283_v5  ;;  %286 = vst [vmem:[%s2776_s12 + $0x18] sm:$0xf] %v285_v6 }
  0x28   : > { %288 = vst [vmem:[%s2776_s12 + $0x1c] sm:$0xf] %v287_v7  ;;  %v289_v8 = vld [vmem:[%s2772_s10 + $0x40] sm:$0xf]  ;;  %v291_v9 = vld [vmem:[%s2772_s10 + $0x48] sm:$0xf] }
  0x29   : > { %v293_v10 = vld [vmem:[%s2772_s10 + $0x50] sm:$0xf]  ;;  %290 = vst [vmem:[%s2776_s12 + $0x20] sm:$0xf] %v289_v8  ;;  %292 = vst [vmem:[%s2776_s12 + $0x24] sm:$0xf] %v291_v9 }
  0x2a   : > { %294 = vst [vmem:[%s2776_s12 + $0x28] sm:$0xf] %v293_v10  ;;  %v295_v11 = vld [vmem:[%s2772_s10 + $0x58] sm:$0xf]  ;;  %v297_v12 = vld [vmem:[%s2772_s10 + $0x60] sm:$0xf] }
  0x2b   : > { %v299_v13 = vld [vmem:[%s2772_s10 + $0x68] sm:$0xf]  ;;  %296 = vst [vmem:[%s2776_s12 + $0x2c] sm:$0xf] %v295_v11  ;;  %298 = vst [vmem:[%s2776_s12 + $0x30] sm:$0xf] %v297_v12 }
  0x2c   : > { %300 = vst [vmem:[%s2776_s12 + $0x34] sm:$0xf] %v299_v13  ;;  %v301_v14 = vld [vmem:[%s2772_s10 + $0x70] sm:$0xf]  ;;  %v303_v15 = vld [vmem:[%s2772_s10 + $0x78] sm:$0xf] }
  0x2d   : > { %v305_v16 = vld [vmem:[%s2772_s10 + $0x80] sm:$0xf]  ;;  %302 = vst [vmem:[%s2776_s12 + $0x38] sm:$0xf] %v301_v14  ;;  %304 = vst [vmem:[%s2776_s12 + $0x3c] sm:$0xf] %v303_v15 }
  0x2e   : > { %306 = vst [vmem:[%s2776_s12 + $0x40] sm:$0xf] %v305_v16  ;;  %v307_v17 = vld [vmem:[%s2772_s10 + $0x88] sm:$0xf]  ;;  %v309_v18 = vld [vmem:[%s2772_s10 + $0x90] sm:$0xf] }
  0x2f   : > { %v311_v19 = vld [vmem:[%s2772_s10 + $0x98] sm:$0xf]  ;;  %308 = vst [vmem:[%s2776_s12 + $0x44] sm:$0xf] %v307_v17  ;;  %310 = vst [vmem:[%s2776_s12 + $0x48] sm:$0xf] %v309_v18 }
  0x30   : > { %312 = vst [vmem:[%s2776_s12 + $0x4c] sm:$0xf] %v311_v19  ;;  %v313_v20 = vld [vmem:[%s2772_s10 + $0xa0] sm:$0xf]  ;;  %v315_v21 = vld [vmem:[%s2772_s10 + $0xa8] sm:$0xf] }
  0x31   : > { %v317_v22 = vld [vmem:[%s2772_s10 + $0xb0] sm:$0xf]  ;;  %314 = vst [vmem:[%s2776_s12 + $0x50] sm:$0xf] %v313_v20  ;;  %316 = vst [vmem:[%s2776_s12 + $0x54] sm:$0xf] %v315_v21 }
  0x32   : > { %318 = vst [vmem:[%s2776_s12 + $0x58] sm:$0xf] %v317_v22  ;;  %v319_v23 = vld [vmem:[%s2772_s10 + $0xb8] sm:$0xf]  ;;  %v321_v24 = vld [vmem:[%s2772_s10 + $0xc0] sm:$0xf] }
  0x33   : > { %v323_v25 = vld [vmem:[%s2772_s10 + $0xc8] sm:$0xf]  ;;  %320 = vst [vmem:[%s2776_s12 + $0x5c] sm:$0xf] %v319_v23  ;;  %322 = vst [vmem:[%s2776_s12 + $0x60] sm:$0xf] %v321_v24 }
  0x34   : > { %324 = vst [vmem:[%s2776_s12 + $0x64] sm:$0xf] %v323_v25  ;;  %v325_v26 = vld [vmem:[%s2772_s10 + $0xd0] sm:$0xf]  ;;  %v327_v27 = vld [vmem:[%s2772_s10 + $0xd8] sm:$0xf] }
  0x35   : > { %v329_v28 = vld [vmem:[%s2772_s10 + $0xe0] sm:$0xf]  ;;  %326 = vst [vmem:[%s2776_s12 + $0x68] sm:$0xf] %v325_v26  ;;  %328 = vst [vmem:[%s2776_s12 + $0x6c] sm:$0xf] %v327_v27 }
  0x36   : > { %330 = vst [vmem:[%s2776_s12 + $0x70] sm:$0xf] %v329_v28  ;;  %v331_v29 = vld [vmem:[%s2772_s10 + $0xe8] sm:$0xf]  ;;  %v333_v30 = vld [vmem:[%s2772_s10 + $0xf0] sm:$0xf] }
  0x37   : > { %v335_v31 = vld [vmem:[%s2772_s10 + $0xf8] sm:$0xf]  ;;  %332 = vst [vmem:[%s2776_s12 + $0x74] sm:$0xf] %v331_v29  ;;  %334 = vst [vmem:[%s2776_s12 + $0x78] sm:$0xf] %v333_v30 }
  0x38   : > { %336 = vst [vmem:[%s2776_s12 + $0x7c] sm:$0xf] %v335_v31  ;;  %v337_v32 = vld [vmem:[%s2772_s10 + $0x100] sm:$0xf]  ;;  %v339_v33 = vld [vmem:[%s2772_s10 + $0x108] sm:$0xf] }
  0x39   : > { %v341_v34 = vld [vmem:[%s2772_s10 + $0x110] sm:$0xf]  ;;  %338 = vst [vmem:[%s2776_s12 + $0x80] sm:$0xf] %v337_v32  ;;  %340 = vst [vmem:[%s2776_s12 + $0x84] sm:$0xf] %v339_v33 }
  0x3a   : > { %342 = vst [vmem:[%s2776_s12 + $0x88] sm:$0xf] %v341_v34  ;;  %v343_v35 = vld [vmem:[%s2772_s10 + $0x118] sm:$0xf]  ;;  %v345_v36 = vld [vmem:[%s2772_s10 + $0x120] sm:$0xf] }
  0x3b   : > { %v347_v37 = vld [vmem:[%s2772_s10 + $0x128] sm:$0xf]  ;;  %344 = vst [vmem:[%s2776_s12 + $0x8c] sm:$0xf] %v343_v35  ;;  %346 = vst [vmem:[%s2776_s12 + $0x90] sm:$0xf] %v345_v36 }
  0x3c   : > { %348 = vst [vmem:[%s2776_s12 + $0x94] sm:$0xf] %v347_v37  ;;  %v349_v38 = vld [vmem:[%s2772_s10 + $0x130] sm:$0xf]  ;;  %v351_v39 = vld [vmem:[%s2772_s10 + $0x138] sm:$0xf] }
  0x3d   : > { %v353_v40 = vld [vmem:[%s2772_s10 + $0x140] sm:$0xf]  ;;  %350 = vst [vmem:[%s2776_s12 + $0x98] sm:$0xf] %v349_v38  ;;  %352 = vst [vmem:[%s2776_s12 + $0x9c] sm:$0xf] %v351_v39 }
  0x3e   : > { %354 = vst [vmem:[%s2776_s12 + $0xa0] sm:$0xf] %v353_v40  ;;  %v355_v41 = vld [vmem:[%s2772_s10 + $0x148] sm:$0xf]  ;;  %v357_v42 = vld [vmem:[%s2772_s10 + $0x150] sm:$0xf] }
  0x3f   : > { %v359_v43 = vld [vmem:[%s2772_s10 + $0x158] sm:$0xf]  ;;  %356 = vst [vmem:[%s2776_s12 + $0xa4] sm:$0xf] %v355_v41  ;;  %358 = vst [vmem:[%s2776_s12 + $0xa8] sm:$0xf] %v357_v42 }
  0x40   : > { %360 = vst [vmem:[%s2776_s12 + $0xac] sm:$0xf] %v359_v43  ;;  %v361_v44 = vld [vmem:[%s2772_s10 + $0x160] sm:$0xf]  ;;  %v363_v45 = vld [vmem:[%s2772_s10 + $0x168] sm:$0xf] }
  0x41   : > { %v365_v46 = vld [vmem:[%s2772_s10 + $0x170] sm:$0xf]  ;;  %362 = vst [vmem:[%s2776_s12 + $0xb0] sm:$0xf] %v361_v44  ;;  %364 = vst [vmem:[%s2776_s12 + $0xb4] sm:$0xf] %v363_v45 }
  0x42   : > { %366 = vst [vmem:[%s2776_s12 + $0xb8] sm:$0xf] %v365_v46  ;;  %v367_v47 = vld [vmem:[%s2772_s10 + $0x178] sm:$0xf]  ;;  %v369_v48 = vld [vmem:[%s2772_s10 + $0x180] sm:$0xf] }
  0x43   : > { %v371_v49 = vld [vmem:[%s2772_s10 + $0x188] sm:$0xf]  ;;  %368 = vst [vmem:[%s2776_s12 + $0xbc] sm:$0xf] %v367_v47  ;;  %370 = vst [vmem:[%s2776_s12 + $0xc0] sm:$0xf] %v369_v48 }
  0x44   : > { %372 = vst [vmem:[%s2776_s12 + $0xc4] sm:$0xf] %v371_v49  ;;  %v373_v50 = vld [vmem:[%s2772_s10 + $0x190] sm:$0xf]  ;;  %v375_v51 = vld [vmem:[%s2772_s10 + $0x198] sm:$0xf] }
  0x45   : > { %v377_v52 = vld [vmem:[%s2772_s10 + $0x1a0] sm:$0xf]  ;;  %374 = vst [vmem:[%s2776_s12 + $0xc8] sm:$0xf] %v373_v50  ;;  %376 = vst [vmem:[%s2776_s12 + $0xcc] sm:$0xf] %v375_v51 }
  0x46   : > { %378 = vst [vmem:[%s2776_s12 + $0xd0] sm:$0xf] %v377_v52  ;;  %v379_v53 = vld [vmem:[%s2772_s10 + $0x1a8] sm:$0xf]  ;;  %v381_v54 = vld [vmem:[%s2772_s10 + $0x1b0] sm:$0xf] }
  0x47   : > { %v383_v55 = vld [vmem:[%s2772_s10 + $0x1b8] sm:$0xf]  ;;  %380 = vst [vmem:[%s2776_s12 + $0xd4] sm:$0xf] %v379_v53  ;;  %382 = vst [vmem:[%s2776_s12 + $0xd8] sm:$0xf] %v381_v54 }
  0x48   : > { %384 = vst [vmem:[%s2776_s12 + $0xdc] sm:$0xf] %v383_v55  ;;  %v385_v56 = vld [vmem:[%s2772_s10 + $0x1c0] sm:$0xf]  ;;  %v387_v57 = vld [vmem:[%s2772_s10 + $0x1c8] sm:$0xf] }
  0x49   : > { %v389_v58 = vld [vmem:[%s2772_s10 + $0x1d0] sm:$0xf]  ;;  %386 = vst [vmem:[%s2776_s12 + $0xe0] sm:$0xf] %v385_v56  ;;  %388 = vst [vmem:[%s2776_s12 + $0xe4] sm:$0xf] %v387_v57 }
  0x4a   : > { %390 = vst [vmem:[%s2776_s12 + $0xe8] sm:$0xf] %v389_v58  ;;  %v391_v59 = vld [vmem:[%s2772_s10 + $0x1d8] sm:$0xf]  ;;  %v393_v60 = vld [vmem:[%s2772_s10 + $0x1e0] sm:$0xf] }
  0x4b   : > { %v395_v61 = vld [vmem:[%s2772_s10 + $0x1e8] sm:$0xf]  ;;  %392 = vst [vmem:[%s2776_s12 + $0xec] sm:$0xf] %v391_v59  ;;  %394 = vst [vmem:[%s2776_s12 + $0xf0] sm:$0xf] %v393_v60 }
  0x4c   : > { %396 = vst [vmem:[%s2776_s12 + $0xf4] sm:$0xf] %v395_v61  ;;  %v397_v62 = vld [vmem:[%s2772_s10 + $0x1f0] sm:$0xf]  ;;  %v399_v63 = vld [vmem:[%s2772_s10 + $0x1f8] sm:$0xf] }
  0x4d   : > { %398 = vst [vmem:[%s2776_s12 + $0xf8] sm:$0xf] %v397_v62  ;;  %400 = vst [vmem:[%s2776_s12 + $0xfc] sm:$0xf] %v399_v63 }
  0x4e PF: > { %551 = sbr.rel (!%p2743_p5) target bundleno = 86 (0x56), region = 77  ;;  %s553_s14 = sand.u32 (%p2743_p5), 1, %s2628_s24  }
  0x4f   : > { %s2066_s15 = sshll.u32 (%p2743_p5), %s2640_s27, 3  ;;  %s2395_s18 = smul.u32 (%p2743_p5), 56, %s553_s14 }
  0x50   : > { %s557_s9 = scalar_lea.vmem (%p2743_p5), %s3153_s5, %s2066_s15 }
  0x51   : > { %v597_v0 = vld [vmem:[%s557_s9] sm:$0xff] (%p2743_p5)  ;;  %v599_v1 = vld [vmem:[%s557_s9 + $0x10] sm:$0xff] (%p2743_p5)  ;;  %s555_s30 = scalar_lea.vmem (%p2743_p5), [#allocation4], %s2395_s18 }
  0x52   : > { %v601_v2 = vld [vmem:[%s557_s9 + $0x20] sm:$0xff] (%p2743_p5)  ;;  %v603_v3 = vld [vmem:[%s557_s9 + $0x30] sm:$0xff] (%p2743_p5)  ;;  %598 = vst [vmem:[%s555_s30] sm:$0xff] (%p2743_p5), %v597_v0  ;;  %600 = vst [vmem:[%s555_s30 + $0x8] sm:$0xff] (%p2743_p5), %v599_v1 }
  0x53   : > { %v605_v4 = vld [vmem:[%s557_s9 + $0x40] sm:$0xff] (%p2743_p5)  ;;  %v607_v5 = vld [vmem:[%s557_s9 + $0x50] sm:$0xff] (%p2743_p5)  ;;  %602 = vst [vmem:[%s555_s30 + $0x10] sm:$0xff] (%p2743_p5), %v601_v2  ;;  %604 = vst [vmem:[%s555_s30 + $0x18] sm:$0xff] (%p2743_p5), %v603_v3 }
  0x54   : > { %606 = vst [vmem:[%s555_s30 + $0x20] sm:$0xff] (%p2743_p5), %v605_v4  ;;  %608 = vst [vmem:[%s555_s30 + $0x28] sm:$0xff] (%p2743_p5), %v607_v5  ;;  %v609_v6 = vld [vmem:[%s557_s9 + $0x60] sm:$0xff] (%p2743_p5) }
  0x55   : > { %610 = vst [vmem:[%s555_s30 + $0x30] sm:$0xff] %v609_v6 }
  0x56 PF: > { %p2067_p11 = scmp.ge.s32.totalorder %s2648_s29, 1  ;;  %p615_p12 = scmp.lt.s32.totalorder %s2648_s29, 5 }
  0x58   : > { %p616_p13 = pnand %p2067_p11, %p615_p12 }
  0x59   : > { %p676_p0 = scmp.lt.s32.totalorder (!%p616_p13), %s2636_s26, 1  ;;  %v2650_v7 = vmov (!%p616_p13), 0   ;;  %v2484_v19 = vld [vmem:[%s3151_s3] ss:$16 sps:$4 sm:$0xff] (!%p616_p13)   ;;  %vm781_vm0 = vcmask (!%p616_p13), 523264   ;;  %v1116_v61 = vld [vmem:[%s3151_s3 + $0x68] sm:$0xff] (!%p616_p13) }
  0x5a   : > { %619 = sbr.rel (%p616_p13) target bundleno = 628 (0x274), region = 115  ;;  %826 = vmatprep.mubr.bf16.mxu0 (!%p616_p13), %v2650_v7  ;;  %v2491_v27 = vld [vmem:[%s3151_s3 + $0x20] ss:$16 sps:$4 sm:$0xff] (!%p616_p13)   ;;  %v2515_v34 = vld [vmem:[%s3151_s3 + $0x4] ss:$16 sps:$4 sm:$0xff] (!%p616_p13)   ;;  %v2124_v63 = vcombine.high (!%p616_p13), %v1116_v61, %v1116_v61  ;;  %v2123_v0 = vcombine.low (!%p616_p13), %v1116_v61, %v1116_v61  ;;  %vm700_vm1 = vcmask (!%p616_p13), 1043584  }
  0x5b   : > { %v2498_v35 = vld [vmem:[%s3151_s3 + $0x40] ss:$16 sps:$4 sm:$0xff] (!%p616_p13)   ;;  %2371 = vmatprep.mubr.bf16.mxu1 (!%p616_p13), %v2515_v34  ;;  %v2514_v43 = vld [vmem:[%s3151_s3 + $0xc] ss:$16 sps:$4 sm:$0xff] (!%p616_p13)   ;;  %v2516_v46 = vld [vmem:[%s3151_s3 + $0x24] ss:$16 sps:$4 sm:$0xff] (!%p616_p13)  }
  0x5c   : > { %v2505_v40 = vld [vmem:[%s3151_s3 + $0x60] ss:$0 sps:$4 sm:$0xff] (!%p616_p13)   ;;  %v2523_v47 = vld [vmem:[%s3151_s3 + $0x44] ss:$16 sps:$4 sm:$0xff] (!%p616_p13)   ;;  %v2512_v52 = vld [vmem:[%s3151_s3 + $0x8] ss:$16 sps:$4 sm:$0xff] (!%p616_p13)  }
  0x5d   : > { %v2517_v54 = vld [vmem:[%s3151_s3 + $0x2c] ss:$16 sps:$4 sm:$0xff] (!%p616_p13)   ;;  %v2524_v55 = vld [vmem:[%s3151_s3 + $0x64] ss:$0 sps:$4 sm:$0xff] (!%p616_p13)   ;;  %v2519_v59 = vld [vmem:[%s3151_s3 + $0x28] ss:$16 sps:$4 sm:$0xff] (!%p616_p13)  }
  0x5e   : > { %v2520_v60 = vld [vmem:[%s3151_s3 + $0x4c] ss:$16 sps:$4 sm:$0xff] (!%p616_p13)   ;;  %v2522_v62 = vld [vmem:[%s3151_s3 + $0x48] ss:$16 sps:$4 sm:$0xff] (!%p616_p13)   ;;  %701 = vst.msk [vmem:[#allocation2 + $0xc] sm:$0xf] (!%p616_p13), %vm700_vm1, %v2650_v7 }
  0x5f   : > { %702 = vst.msk [vmem:[#allocation2 + $0x1c] sm:$0xf] (!%p616_p13), %vm700_vm1, %v2650_v7  ;;  %703 = vst.msk [vmem:[#allocation2 + $0x2c] sm:$0xf] (!%p616_p13), %vm700_vm1, %v2650_v7  ;;  %vm692_vm2 = vcmask (!%p616_p13), 1043968   ;;  %vm1102_vm3 = vcmask (!%p616_p13), 519168  }
  0x60   : > { %704 = vst.msk [vmem:[#allocation2 + $0x3c] sm:$0xf] (!%p616_p13), %vm700_vm1, %v2650_v7  ;;  %705 = vst.msk [vmem:[#allocation2 + $0x4c] sm:$0xf] (!%p616_p13), %vm700_vm1, %v2650_v7  ;;  %vm1375_vm4 = vcmask (!%p616_p13), 125952   ;;  %s673_s19 = sand.u32 (!%p616_p13), 1, %s2616_s21  }
  0x61   : > { %s677_s11 = scalar_select %p676_p0, %s2636_s26, 1  ;;  %706 = vst.msk [vmem:[#allocation2 + $0x5c] sm:$0xf] %vm700_vm1, %v2650_v7  ;;  %707 = vst.msk [vmem:[#allocation2 + $0x6c] sm:$0xf] %vm700_vm1, %v2650_v7 }
  0x62   : > { %695 = vst.msk [vmem:[#allocation2 + $0x28] sm:$0xf] %vm692_vm2, %v2650_v7  ;;  %693 = vst.msk [vmem:[#allocation2 + $0x8] sm:$0xf] %vm692_vm2, %v2650_v7  ;;  %s2397_s30 = smul.u32 56, %s673_s19 }
  0x63   : > { %s2199_s10 = sshll.u32 %s677_s11, 6  ;;  %s2201_s18 = sshll.u32 %s677_s11, 7  ;;  %694 = vst.msk [vmem:[#allocation2 + $0x18] sm:$0xf] %vm692_vm2, %v2650_v7  ;;  %696 = vst.msk [vmem:[#allocation2 + $0x38] sm:$0xf] %vm692_vm2, %v2650_v7 }
  0x64   : > { %s680_s15 = scalar_lea.vmem %s3148_s0, %s2199_s10  ;;  %s2922_s9 = scalar_lea.vmem %s3150_s2, %s2201_s18  ;;  %697 = vst.msk [vmem:[#allocation2 + $0x48] sm:$0xf] %vm692_vm2, %v2650_v7  ;;  %698 = vst.msk [vmem:[#allocation2 + $0x58] sm:$0xf] %vm692_vm2, %v2650_v7 }
  0x65   : > { %v2472_v8 = vld [vmem:[%s680_s15 + $0x4] ss:$8 sps:$4 sm:$0xff]   ;;  %v2474_v9 = vld [vmem:[%s680_s15] ss:$8 sps:$4 sm:$0xff]   ;;  %v2475_v10 = vld [vmem:[%s680_s15 + $0x14] ss:$8 sps:$4 sm:$0xff]   ;;  %s2927_s12 = scalar_lea.vmem %s3149_s1, %s2199_s10 }
  0x66   : > { %794 = vmatprep.subr.bf16.mxu0 %v2472_v8  ;;  %v2477_v11 = vld [vmem:[%s680_s15 + $0x10] ss:$8 sps:$4 sm:$0xff]   ;;  %v2478_v12 = vld [vmem:[%s680_s15 + $0x24] ss:$8 sps:$4 sm:$0xff]   ;;  %v2480_v13 = vld [vmem:[%s680_s15 + $0x20] ss:$8 sps:$4 sm:$0xff]  }
  0x67   : > { %795 = vmatpush1.bf16.msra.mxu0 %v2474_v9  ;;  %v2481_v14 = vld [vmem:[%s680_s15 + $0x34] ss:$8 sps:$4 sm:$0xff]   ;;  %v2487_v15 = vld [vmem:[%s2927_s12] sm:$0xff]   ;;  %v2483_v16 = vld [vmem:[%s680_s15 + $0x30] ss:$8 sps:$4 sm:$0xff]   ;;  %s622_s15 = sand.u32 1, %s2624_s23  }
  0x68   : > { %796 = vmatprep.subr.bf16.mxu0 %v2475_v10  ;;  %2355 = vmatprep.subr.bf16.mxu1 %v2487_v15  ;;  %v2490_v17 = vld [vmem:[%s2927_s12 + $0x8] sm:$0xff]   ;;  %v2485_v18 = vld [vmem:[%s2922_s9 + $0x40] sm:$0xff]   ;;  %v2494_v20 = vld [vmem:[%s2927_s12 + $0x10] sm:$0xff]   ;;  %s2068_s4 = sshll.u32 %s622_s15, 8  ;;  %699 = vst.msk [vmem:[#allocation2 + $0x68] sm:$0xf] %vm692_vm2, %v2650_v7 }
  0x69   : > { %2356 = vmatpush3.bf16.msra.mxu1 %v2487_v15  ;;  %v2486_v21 = vld [vmem:[%s2922_s9] sm:$0xff]   ;;  %v2488_v22 = vld [vmem:[%s2922_s9 + $0x48] sm:$0xff]   ;;  %v2497_v23 = vld [vmem:[%s2927_s12 + $0x18] sm:$0xff]   ;;  %s2970_s11 = scalar_lea.vmem [#allocation3], %s2068_s4  ;;  %s3093_s23 = scalar_lea.vmem [#allocation5], %s2397_s30 }
  0x6a   : > { %2357 = vmatprep.subr.bf16.mxu1 %v2490_v17  ;;  %v2489_v24 = vld [vmem:[%s2922_s9 + $0x8] sm:$0xff]   ;;  %v2492_v25 = vld [vmem:[%s2922_s9 + $0x50] sm:$0xff]   ;;  %v2501_v26 = vld [vmem:[%s2927_s12 + $0x20] sm:$0xff]   ;;  %s2398_s21 = smul.u32 (%p2757_p9), 14, %s2636_s26 }
  0x6b   : > { %797 = vmatpush1.bf16.msra.mxu0 %v2477_v11  ;;  %v2493_v28 = vld [vmem:[%s2922_s9 + $0x10] sm:$0xff]   ;;  %v2495_v29 = vld [vmem:[%s2922_s9 + $0x58] sm:$0xff]   ;;  %v2504_v30 = vld [vmem:[%s2927_s12 + $0x28] sm:$0xff]  }
  0x6c   : > { %798 = vmatprep.subr.bf16.mxu0 %v2478_v12  ;;  %v2496_v31 = vld [vmem:[%s2922_s9 + $0x18] sm:$0xff]   ;;  %v2499_v32 = vld [vmem:[%s2922_s9 + $0x60] sm:$0xff]   ;;  %v2508_v33 = vld [vmem:[%s2927_s12 + $0x30] sm:$0xff]  }
  0x6d   : > { %2358 = vmatpush3.bf16.msra.mxu1 %v2490_v17  ;;  %v2500_v36 = vld [vmem:[%s2922_s9 + $0x20] sm:$0xff]   ;;  %v2502_v37 = vld [vmem:[%s2922_s9 + $0x68] sm:$0xff]   ;;  %v2511_v38 = vld [vmem:[%s2927_s12 + $0x38] sm:$0xff]  }
  0x6e   : > { %2359 = vmatprep.subr.bf16.mxu1 %v2494_v20  ;;  %v2503_v39 = vld [vmem:[%s2922_s9 + $0x28] sm:$0xff]   ;;  %v2506_v41 = vld [vmem:[%s2922_s9 + $0x70] sm:$0xff]   ;;  %v2509_v45 = vld [vmem:[%s2922_s9 + $0x78] sm:$0xff]  }
  0x6f   : > { %799 = vmatpush1.bf16.msra.mxu0 %v2480_v13  ;;  %v2507_v42 = vld [vmem:[%s2922_s9 + $0x30] sm:$0xff]   ;;  %v2510_v48 = vld [vmem:[%s2922_s9 + $0x38] sm:$0xff]   ;;  %v2531_v53 = vld [vmem:[%s2970_s11 + $0x50] sm:$0xff]  }
  0x70   : > { %800 = vmatprep.subr.bf16.mxu0 %v2481_v14  ;;  %v2527_v44 = vld [vmem:[%s2970_s11 + $0x40] sm:$0xff]   ;;  %v2529_v50 = vld [vmem:[%s2970_s11 + $0x48] sm:$0xff]   ;;  %v2532_v56 = vld [vmem:[%s2970_s11 + $0x10] sm:$0xff]  }
  0x71   : > { %2360 = vmatpush3.bf16.msra.mxu1 %v2494_v20  ;;  %v2528_v49 = vld [vmem:[%s2970_s11] sm:$0xff]   ;;  %v2530_v51 = vld [vmem:[%s2970_s11 + $0x8] sm:$0xff]   ;;  %v2533_v57 = vld [vmem:[%s2970_s11 + $0x58] sm:$0xff]  }
  0x72   : > { %2361 = vmatprep.subr.bf16.mxu1 %v2497_v23  ;;  %v2534_v58 = vld [vmem:[%s2970_s11 + $0x18] sm:$0xff]   ;;  %v2535_v1 = vld [vmem:[%s2970_s11 + $0x60] sm:$0xff]   ;;  %v2537_v3 = vld [vmem:[%s2970_s11 + $0x68] sm:$0xff]  }
  0x73   : > { %801 = vmatpush1.bf16.msra.mxu0 %v2483_v16  ;;  %v2536_v2 = vld [vmem:[%s2970_s11 + $0x20] sm:$0xff]   ;;  %v2538_v4 = vld [vmem:[%s2970_s11 + $0x28] sm:$0xff]   ;;  %v2539_v5 = vld [vmem:[%s2970_s11 + $0x70] sm:$0xff]  }
  0x74   : > { %2235 = vmatprep.subr.bf16.mxu0 %v2485_v18  ;;  %v2540_v6 = vld [vmem:[%s2970_s11 + $0x30] sm:$0xff]   ;;  %v2541_v8 = vld [vmem:[%s2970_s11 + $0x78] sm:$0xff]   ;;  %v2543_v10 = vld [vmem:[%s2970_s11 + $0xc0] sm:$0xff]  }
  0x75   : > { %2362 = vmatpush3.bf16.msra.mxu1 %v2497_v23  ;;  %v2542_v9 = vld [vmem:[%s2970_s11 + $0x38] sm:$0xff]   ;;  %v2544_v11 = vld [vmem:[%s2970_s11 + $0x80] sm:$0xff]   ;;  %v2545_v12 = vld [vmem:[%s2970_s11 + $0xc8] sm:$0xff]  }
  0x76   : > { %2087 = vmatmul.mubr.msk.bf16.vlgmr.msra.gmra.mrb[0].mxu0 %vm781_vm0, %v2484_v19  ;;  %2363 = vmatprep.subr.bf16.mxu1 %v2501_v26  ;;  %v2546_v13 = vld [vmem:[%s2970_s11 + $0x88] sm:$0xff]   ;;  %v2547_v14 = vld [vmem:[%s2970_s11 + $0xd0] sm:$0xff]   ;;  %v2549_v16 = vld [vmem:[%s2970_s11 + $0xd8] sm:$0xff]  }
  0x77   : > { %2236 = vmatpush3.bf16.msra.mxu0 %v2486_v21  ;;  %836 = vmatprep.mubr.bf16.mxu0 %v2650_v7  ;;  %v2548_v15 = vld [vmem:[%s2970_s11 + $0x90] sm:$0xff]   ;;  %v3034_v17 = vld [vmem:[%s2970_s11 + $0x98] sm:$0xff]   ;;  %v2551_v18 = vld [vmem:[%s2970_s11 + $0xe0] sm:$0xff]  }
  0x78   : > { %2237 = vmatprep.subr.bf16.mxu0 %v2488_v22  ;;  %v2552_v19 = vld [vmem:[%s2970_s11 + $0xa0] sm:$0xff]   ;;  %v2553_v20 = vld [vmem:[%s2970_s11 + $0xe8] sm:$0xff]   ;;  %v2555_v22 = vld [vmem:[%s2970_s11 + $0xf0] sm:$0xff]  }
  0x79   : > { %2364 = vmatpush3.bf16.msra.mxu1 %v2501_v26  ;;  %v2554_v21 = vld [vmem:[%s2970_s11 + $0xa8] sm:$0xff]   ;;  %v3057_v23 = vld [vmem:[%s2970_s11 + $0xb0] sm:$0xff]  }
  0x7a   : > { %2365 = vmatprep.subr.bf16.mxu1 %v2504_v30 }
  0x7b   : > { %2238 = vmatpush3.bf16.msra.mxu0 %v2489_v24  ;;  %v3061_v24 = vld [vmem:[%s2970_s11 + $0xf8] sm:$0xff]  }
  0x7c   : > { %2239 = vmatprep.subr.bf16.mxu0 %v2492_v25  ;;  %v3064_v25 = vld [vmem:[%s2970_s11 + $0xb8] sm:$0xff]   ;;  %s2396_s11 = smul.u32 56, %s622_s15  ;;  %s1877_s15 = sadd.s32 (%p2757_p9), %s2632_s25, %s2398_s21 }
  0x7d   : > { %2366 = vmatpush3.bf16.msra.mxu1 %v2504_v30  ;;  %s2196_s16 = sshll.u32 (%p2757_p9), %s1877_s15, 3 }
  0x7e   : > { %2088 = vmatmul.mubr.msk.bf16.gmra.mrb[4].mxu0 %vm781_vm0, %v2491_v27  ;;  %2367 = vmatprep.subr.bf16.mxu1 %v2508_v33  ;;  %s3089_s20 = scalar_lea.vmem [#allocation4], %s2396_s11  ;;  %s1879_s14 = scalar_lea.vmem (%p2757_p9), %s3154_s6, %s2196_s16 }
  0x7f   : > { %2240 = vmatpush3.bf16.msra.mxu0 %v2493_v28  ;;  %846 = vmatprep.mubr.bf16.mxu0 %v2650_v7 }
  0x80   : > { %2241 = vmatprep.subr.bf16.mxu0 %v2495_v29 }
  0x81   : > { %2368 = vmatpush3.bf16.msra.mxu1 %v2508_v33 }
  0x82   : > { %2369 = vmatprep.subr.bf16.mxu1 %v2511_v38 }
  0x83   : > { %2242 = vmatpush3.bf16.msra.mxu0 %v2496_v31 }
  0x84   : > { %2243 = vmatprep.subr.bf16.mxu0 %v2499_v32 }
  0x85   : > { %2370 = vmatpush3.bf16.msra.mxu1 %v2511_v38 }
  0x86   : > { %2089 = vmatmul.mubr.msk.bf16.gmra.mrb[8].mxu0 %vm781_vm0, %v2498_v35  ;;  %2275 = vmatprep.subr.bf16.mxu1 %v2527_v44 }
  0x87   : > { %2244 = vmatpush3.bf16.msra.mxu0 %v2500_v36  ;;  %856 = vmatprep.mubr.bf16.mxu0 %v2650_v7 }
  0x88   : > { %2245 = vmatprep.subr.bf16.mxu0 %v2502_v37  ;;  %2372 = vmatmul.mubr.bf16.vlgmr.msra.gmra.mrb[0].mxu1 %v2516_v46 }
  0x89   : > { %2375 = vmatprep.mubr.bf16.mxu1 %v2523_v47  ;;  %2276 = vmatpush3.bf16.msra.mxu1 %v2528_v49 }
  0x8a   : > { %2277 = vmatprep.subr.bf16.mxu1 %v2529_v50 }
  0x8b   : > { %2246 = vmatpush3.bf16.msra.mxu0 %v2503_v39 }
  0x8c   : > { %2247 = vmatprep.subr.bf16.mxu0 %v2506_v41 }
  0x8d   : > { %2278 = vmatpush3.bf16.msra.mxu1 %v2530_v51 }
  0x8e   : > { %2090 = vmatmul.mubr.msk.bf16.gmra.mrb[12].mxu0 %vm781_vm0, %v2505_v40  ;;  %2279 = vmatprep.subr.bf16.mxu1 %v2531_v53 }
  0x8f   : > { %2248 = vmatpush3.bf16.msra.mxu0 %v2507_v42  ;;  %1314 = vmatprep.mubr.bf16.mxu0 %v2514_v43 }
  0x90   : > { %2249 = vmatprep.subr.bf16.mxu0 %v2509_v45  ;;  %2376 = vmatmul.mubr.bf16.gmra.mrb[4].mxu1 %v2524_v55 }
  0x91   : > { %2280 = vmatpush3.bf16.msra.mxu1 %v2532_v56 }
  0x92   : > { %2281 = vmatprep.subr.bf16.mxu1 %v2533_v57 }
  0x93   : > { %2250 = vmatpush3.bf16.msra.mxu0 %v2510_v48 }
  0x94   : > { %2315 = vmatprep.subr.bf16.mxu0 %v2543_v10 }
  0x95   : > { %2282 = vmatpush3.bf16.msra.mxu1 %v2534_v58 }
  0x96   : > { %1315 = vmatmul.mubr.bf16.vlgmr.msra.gmra.mrb[16].mxu0 %v2512_v52  ;;  %2283 = vmatprep.subr.bf16.mxu1 %v2535_v1 }
  0x97   : > { %1322 = vmatprep.mubr.bf16.mxu0 %v2517_v54  ;;  %2316 = vmatpush3.bf16.msra.mxu0 %v2544_v11 }
  0x98   : > { %2317 = vmatprep.subr.bf16.mxu0 %v2545_v12 }
  0x99   : > { %2284 = vmatpush3.bf16.msra.mxu1 %v2536_v2 }
  0x9a   : > { %2285 = vmatprep.subr.bf16.mxu1 %v2537_v3 }
  0x9b   : > { %2318 = vmatpush3.bf16.msra.mxu0 %v2546_v13 }
  0x9c   : > { %2319 = vmatprep.subr.bf16.mxu0 %v2547_v14 }
  0x9d   : > { %2286 = vmatpush3.bf16.msra.mxu1 %v2538_v4 }
  0x9e   : > { %1323 = vmatmul.mubr.bf16.gmra.mrb[20].mxu0 %v2519_v59  ;;  %2287 = vmatprep.subr.bf16.mxu1 %v2539_v5 }
  0x9f   : > { %1330 = vmatprep.mubr.bf16.mxu0 %v2520_v60  ;;  %2320 = vmatpush3.bf16.msra.mxu0 %v2548_v15 }
  0xa0   : > { %2321 = vmatprep.subr.bf16.mxu0 %v2549_v16 }
  0xa1   : > { %2288 = vmatpush3.bf16.msra.mxu1 %v2540_v6 }
  0xa2   : > { %2289 = vmatprep.subr.bf16.mxu1 %v2541_v8 }
  0xa3   : > { %2322 = vmatpush3.bf16.msra.mxu0 %v3034_v17 }
  0xa4   : > { %2323 = vmatprep.subr.bf16.mxu0 %v2551_v18 }
  0xa5   : > { %2290 = vmatpush3.bf16.msra.mxu1 %v2542_v9 }
  0xa6   : > { %1331 = vmatmul.mubr.bf16.gmra.mrb[24].mxu0 %v2522_v62  ;;  %2379 = vmatprep.subr.bf16.mxu1 %v2543_v10 }
  0xa7   : > { %1338 = vmatprep.mubr.bf16.mxu0 %v2124_v63  ;;  %2324 = vmatpush3.bf16.msra.mxu0 %v2552_v19 }
  0xa8   : > { %2325 = vmatprep.subr.bf16.mxu0 %v2553_v20 }
  0xab   : > { %2326 = vmatpush3.bf16.msra.mxu0 %v2554_v21 }
  0xac   : > { %2327 = vmatprep.subr.bf16.mxu0 %v2555_v22 }
  0xae   : > { %1339 = vmatmul.mubr.bf16.gmra.mrb[28].mxu0 %v2123_v0 }
  0xaf   : > { %2328 = vmatpush3.bf16.msra.mxu0 %v3057_v23 }
  0xb0   : > { %2329 = vmatprep.subr.bf16.mxu0 %v3061_v24 }
  0xb3   : > { %2330 = vmatpush3.bf16.msra.mxu0 %v3064_v25 }
 0x149   : > { %v828_v26 = vpop.f32.mrb[0].mxu0 }
 0x14a   : > { %v830_v27 = vpop.f32.mrb[1].mxu0 }
 0x14b   : > { %v832_v7 = vpop.f32.mrb[2].mxu0 }
 0x14c   : > { %v834_v28 = vpop.f32.mrb[3].mxu0  ;;  %v2570_v29 = vpack.c.bf16 %v832_v7, %v828_v26 }
 0x14d   : > { %v2571_v30 = vpack.c.bf16 %v834_v28, %v830_v27 }
 0x14f   : > { %1766 = vmatprep.mubr.bf16.mxu1 %v2571_v30 }
 0x150   : > { %1767 = vmatmul.mubr.bf16.vlgmr.msra.gmra.mrb[8].mxu1 %v2570_v29 }
 0x151   : > { %v838_v31 = vpop.f32.mrb[4].mxu0  ;;  %2387 = vmatpush3.bf16.msra.mxu1 %v2544_v11 }
 0x152   : > { %v840_v32 = vpop.f32.mrb[5].mxu0  ;;  %2380 = vmatprep.subr.bf16.mxu1 %v2545_v12 }
 0x153   : > { %v842_v33 = vpop.f32.mrb[6].mxu0 }
 0x154   : > { %v844_v34 = vpop.f32.mrb[7].mxu0  ;;  %v2573_v36 = vpack.c.bf16 %v842_v33, %v838_v31 }
 0x155   : > { %v2572_v35 = vpack.c.bf16 %v844_v34, %v840_v32  ;;  %2388 = vmatpush3.bf16.msra.mxu1 %v2546_v13 }
 0x156   : > { %2381 = vmatprep.subr.bf16.mxu1 %v2547_v14 }
 0x157   : > { %1774 = vmatprep.mubr.bf16.mxu1 %v2572_v35 }
 0x158   : > { %1775 = vmatmul.mubr.bf16.gmra.mrb[12].mxu1 %v2573_v36 }
 0x159   : > { %v848_v37 = vpop.f32.mrb[8].mxu0  ;;  %2389 = vmatpush3.bf16.msra.mxu1 %v2548_v15 }
 0x15a   : > { %v850_v38 = vpop.f32.mrb[9].mxu0  ;;  %2382 = vmatprep.subr.bf16.mxu1 %v2549_v16 }
 0x15b   : > { %v852_v39 = vpop.f32.mrb[10].mxu0  ;;  %v2373_v46 = vpop.f32.mrb[0].mxu1 }
 0x15c   : > { %v854_v40 = vpop.f32.mrb[11].mxu0  ;;  %v2575_v42 = vpack.c.bf16 %v852_v39, %v848_v37  ;;  %v2211_v48 = vpack.c.bf16 %v2373_v46, %v2373_v46  ;;  %v1043_v49 = vpop.f32.mrb[1].mxu1 }
 0x15d   : > { %v2574_v41 = vpack.c.bf16 %v854_v40, %v850_v38  ;;  %2390 = vmatpush3.bf16.msra.mxu1 %v3034_v17  ;;  %v2209_v50 = vpack.c.bf16 %v1043_v49, %v1043_v49  ;;  %v2374_v51 = vpop.f32.mrb[2].mxu1 }
 0x15e   : > { %2383 = vmatprep.subr.bf16.mxu1 %v2551_v18  ;;  %1105 = vst.msk [vmem:[#allocation2 + $0x28] sm:$0xf] %vm1102_vm3, %v2211_v48  ;;  %v2212_v53 = vpack.c.bf16 %v2374_v51, %v2374_v51  ;;  %v1046_v54 = vpop.f32.mrb[3].mxu1 }
 0x15f   : > { %1782 = vmatprep.mubr.bf16.mxu1 %v2574_v41  ;;  %1103 = vst.msk [vmem:[#allocation2 + $0x8] sm:$0xf] %vm1102_vm3, %v2209_v50  ;;  %v2210_v55 = vpack.c.bf16 %v1046_v54, %v1046_v54 }
 0x160   : > { %1783 = vmatmul.mubr.bf16.gmra.mrb[16].mxu1 %v2575_v42  ;;  %1106 = vst.msk [vmem:[#allocation2 + $0x38] sm:$0xf] %vm1102_vm3, %v2212_v53 }
 0x161   : > { %v858_v43 = vpop.f32.mrb[12].mxu0  ;;  %2391 = vmatpush3.bf16.msra.mxu1 %v2552_v19  ;;  %1104 = vst.msk [vmem:[#allocation2 + $0x18] sm:$0xf] %vm1102_vm3, %v2210_v55 }
 0x162   : > { %v860_v44 = vpop.f32.mrb[13].mxu0  ;;  %2384 = vmatprep.subr.bf16.mxu1 %v2553_v20  ;;  %v2577_v56 = vpack.c.bf16 %v858_v43, %v858_v43 }
 0x163   : > { %v862_v45 = vpop.f32.mrb[14].mxu0  ;;  %v2576_v52 = vpack.c.bf16 %v860_v44, %v860_v44  ;;  %v2377_v61 = vpop.f32.mrb[4].mxu1 }
 0x164   : > { %v863_v47 = vpop.f32.mrb[15].mxu0  ;;  %v2215_v63 = vpack.c.bf16 %v2377_v61, %v2377_v61  ;;  %v1059_v0 = vpop.f32.mrb[5].mxu1 }
 0x165   : > { %1790 = vmatprep.mubr.bf16.mxu1 %v2576_v52  ;;  %2392 = vmatpush3.bf16.msra.mxu1 %v2554_v21  ;;  %v2213_v3 = vpack.c.bf16 %v1059_v0, %v1059_v0  ;;  %v2378_v4 = vpop.f32.mrb[6].mxu1  ;;  %v1462_v0 = vld [vmem:[%s3089_s20 + $0x8] sm:$0xff] }
 0x166   : > { %2385 = vmatprep.subr.bf16.mxu1 %v2555_v22  ;;  %1109 = vst.msk [vmem:[#allocation2 + $0x68] sm:$0xf] %vm1102_vm3, %v2215_v63  ;;  %v1062_v5 = vpop.f32.mrb[7].mxu1 }
 0x167   : > { %1107 = vst.msk [vmem:[#allocation2 + $0x48] sm:$0xf] %vm1102_vm3, %v2213_v3  ;;  %v2214_v8 = vpack.c.bf16 %v1062_v5, %v1062_v5  ;;  %v2564_v7 = vld [vmem:[#allocation2 + $0x28] ss:$16 sps:$4 sm:$0xff]  }
 0x168   : > { %1791 = vmatmul.mubr.bf16.gmra.mrb[20].mxu1 %v2577_v56  ;;  %v2559_v17 = vld [vmem:[#allocation2 + $0x8] ss:$16 sps:$4 sm:$0xff]  }
 0x169   : > { %v2251_v57 = vpop.f32.mrb[16].mxu0  ;;  %2393 = vmatpush3.bf16.msra.mxu1 %v3057_v23  ;;  %1108 = vst.msk [vmem:[#allocation2 + $0x58] sm:$0xf] %vm1102_vm3, %v2214_v8 }
 0x16a   : > { %v2252_v58 = vpop.f32.mrb[17].mxu0  ;;  %2386 = vmatprep.subr.bf16.mxu1 %v3061_v24 }
 0x16b   : > { %v2253_v59 = vadd.f32 %v2252_v58, %v2251_v57  ;;  %v2254_v60 = vpop.f32.mrb[18].mxu0 }
 0x16c   : > { %v2255_v62 = vpop.f32.mrb[19].mxu0 }
 0x16d   : > { %v2216_v1 = vpack.c.bf16 %v2253_v59, %v2253_v59  ;;  %v2256_v2 = vadd.f32 %v2255_v62, %v2254_v60  ;;  %2394 = vmatpush3.bf16.msra.mxu1 %v3064_v25  ;;  %v1461_v62 = vld [vmem:[%s3089_s20] sm:$0xff] }
 0x16f   : > { %1376 = vst.msk [vmem:[#allocation2 + $0xc] sm:$0xf] %vm1375_vm4, %v2216_v1  ;;  %v2217_v6 = vpack.c.bf16 %v2256_v2, %v2256_v2 }
 0x170   : > { %v2567_v35 = vld [vmem:[#allocation2 + $0x48] ss:$16 sps:$4 sm:$0xff]  }
 0x171   : > { %1377 = vst.msk [vmem:[#allocation2 + $0x1c] sm:$0xf] %vm1375_vm4, %v2217_v6  ;;  %v2257_v9 = vpop.f32.mrb[20].mxu0 }
 0x172   : > { %v2258_v10 = vpop.f32.mrb[21].mxu0 }
 0x173   : > { %v2259_v11 = vadd.f32 %v2258_v10, %v2257_v9  ;;  %v2260_v12 = vpop.f32.mrb[22].mxu0 }
 0x174   : > { %v2261_v13 = vpop.f32.mrb[23].mxu0 }
 0x175   : > { %v2218_v14 = vpack.c.bf16 %v2259_v11, %v2259_v11  ;;  %v2262_v15 = vadd.f32 %v2261_v13, %v2260_v12  ;;  %v1463_v11 = vld [vmem:[%s3089_s20 + $0x10] sm:$0xff]  ;;  %v1464_v13 = vld [vmem:[%s3089_s20 + $0x18] sm:$0xff] }
 0x177   : > { %1378 = vst.msk [vmem:[#allocation2 + $0x2c] sm:$0xf] %vm1375_vm4, %v2218_v14  ;;  %v2219_v16 = vpack.c.bf16 %v2262_v15, %v2262_v15 }
 0x178   : > { %v2561_v18 = vld [vmem:[#allocation2 + $0xc] ss:$16 sps:$4 sm:$0xff]  }
 0x179   : > { %1379 = vst.msk [vmem:[#allocation2 + $0x3c] sm:$0xf] %vm1375_vm4, %v2219_v16  ;;  %v2263_v19 = vpop.f32.mrb[24].mxu0  ;;  %1830 = vmatprep.mubr.bf16.mxu0 %v2561_v18 }
 0x17a   : > { %v2264_v20 = vpop.f32.mrb[25].mxu0  ;;  %1831 = vmatmul.mubr.bf16.vlgmr.msra.gmra.mrb[32].mxu0 %v2559_v17 }
 0x17b   : > { %v2265_v21 = vadd.f32 %v2264_v20, %v2263_v19  ;;  %v2266_v22 = vpop.f32.mrb[26].mxu0 }
 0x17c   : > { %v2267_v23 = vpop.f32.mrb[27].mxu0 }
 0x17d   : > { %v2220_v24 = vpack.c.bf16 %v2265_v21, %v2265_v21  ;;  %v2268_v25 = vadd.f32 %v2267_v23, %v2266_v22  ;;  %v1465_v23 = vld [vmem:[%s3089_s20 + $0x20] sm:$0xff] }
 0x17f   : > { %1380 = vst.msk [vmem:[#allocation2 + $0x4c] sm:$0xf] %vm1375_vm4, %v2220_v24  ;;  %v2221_v26 = vpack.c.bf16 %v2268_v25, %v2268_v25  ;;  %v1466_v25 = vld [vmem:[%s3089_s20 + $0x28] sm:$0xff] }
 0x180   : > { %v2562_v27 = vld [vmem:[#allocation2 + $0x2c] ss:$16 sps:$4 sm:$0xff]  }
 0x181   : > { %1381 = vst.msk [vmem:[#allocation2 + $0x5c] sm:$0xf] %vm1375_vm4, %v2221_v26  ;;  %v2269_v28 = vpop.f32.mrb[28].mxu0  ;;  %1838 = vmatprep.mubr.bf16.mxu0 %v2562_v27 }
 0x182   : > { %v2270_v29 = vpop.f32.mrb[29].mxu0  ;;  %1839 = vmatmul.mubr.bf16.gmra.mrb[36].mxu0 %v2564_v7 }
 0x183   : > { %v2271_v30 = vadd.f32 %v2270_v29, %v2269_v28  ;;  %v2272_v31 = vpop.f32.mrb[30].mxu0 }
 0x184   : > { %v2273_v32 = vpop.f32.mrb[31].mxu0 }
 0x185   : > { %v2222_v33 = vpack.c.bf16 %v2271_v30, %v2271_v30 }
 0x187   : > { %1382 = vst.msk [vmem:[#allocation2 + $0x6c] sm:$0xf] %vm1375_vm4, %v2222_v33  ;;  %v1467_v33 = vld [vmem:[%s3089_s20 + $0x30] sm:$0xff] }
 0x188   : > { %v2565_v34 = vld [vmem:[#allocation2 + $0x4c] ss:$16 sps:$4 sm:$0xff]  }
 0x189   : > { %1846 = vmatprep.mubr.bf16.mxu0 %v2565_v34 }
 0x18a   : > { %1847 = vmatmul.mubr.bf16.gmra.mrb[40].mxu0 %v2567_v35 }
 0x18e   : > { %v1396_v36 = vld [vmem:[#allocation2 + $0x68] sm:$0xff] }
 0x18f   : > { %v2162_v37 = vcombine.low %v1396_v36, %v1396_v36  ;;  %v2163_v38 = vcombine.high %v1396_v36, %v1396_v36 }
 0x191   : > { %1854 = vmatprep.mubr.bf16.mxu1 %v2163_v38 }
 0x192   : > { %1855 = vmatmul.mubr.bf16.vlgmr.msra.gmra.mrb[24].mxu1 %v2162_v37 }
 0x223   : > { %v2291_v39 = vpop.f32.mrb[8].mxu1 }
 0x224   : > { %v2292_v40 = vpop.f32.mrb[9].mxu1 }
 0x225   : > { %v2293_v41 = vadd.f32 %v2292_v40, %v2291_v39  ;;  %v2294_v42 = vpop.f32.mrb[10].mxu1 }
 0x226   : > { %v2295_v43 = vpop.f32.mrb[11].mxu1 }
 0x227   : > { %v2296_v44 = vadd.f32 %v2295_v43, %v2294_v42  ;;  %v1769_v2 = vadd.f32 %v2293_v41, %v1461_v62 }
 0x229   : > { %v1772_v6 = vadd.f32 %v2296_v44, %v1462_v0 }
 0x22b   : > { %v2297_v45 = vpop.f32.mrb[12].mxu1 }
 0x22c   : > { %v2298_v46 = vpop.f32.mrb[13].mxu1 }
 0x22d   : > { %v2299_v47 = vadd.f32 %v2298_v46, %v2297_v45  ;;  %v2300_v48 = vpop.f32.mrb[14].mxu1 }
 0x22e   : > { %v2301_v49 = vpop.f32.mrb[15].mxu1 }
 0x22f   : > { %v2302_v50 = vadd.f32 %v2301_v49, %v2300_v48  ;;  %v1777_v15 = vadd.f32 %v2299_v47, %v1463_v11 }
 0x231   : > { %v1780_v19 = vadd.f32 %v2302_v50, %v1464_v13 }
 0x233   : > { %v2303_v51 = vpop.f32.mrb[16].mxu1 }
 0x234   : > { %v2304_v52 = vpop.f32.mrb[17].mxu1 }
 0x235   : > { %v2305_v53 = vadd.f32 %v2304_v52, %v2303_v51  ;;  %v2306_v54 = vpop.f32.mrb[18].mxu1 }
 0x236   : > { %v2307_v55 = vpop.f32.mrb[19].mxu1 }
 0x237   : > { %v2308_v56 = vadd.f32 %v2307_v55, %v2306_v54  ;;  %v1785_v27 = vadd.f32 %v2305_v53, %v1465_v23 }
 0x239   : > { %v1788_v30 = vadd.f32 %v2308_v56, %v1466_v25 }
 0x23b   : > { %v2309_v57 = vpop.f32.mrb[20].mxu1 }
 0x23c   : > { %v2310_v58 = vpop.f32.mrb[21].mxu1 }
 0x23d   : > { %v2311_v59 = vadd.f32 %v2310_v58, %v2309_v57  ;;  %v2312_v60 = vpop.f32.mrb[22].mxu1 }
 0x23e   : > { %v2313_v61 = vpop.f32.mrb[23].mxu1 }
 0x23f   : > { %v1793_v37 = vadd.f32 %v2311_v59, %v1467_v33 }
 0x24d   : > { %v2331_v63 = vpop.f32.mrb[32].mxu0 }
 0x24e   : > { %v2332_v1 = vpop.f32.mrb[33].mxu0 }
 0x24f   : > { %v2333_v3 = vadd.f32 %v2332_v1, %v2331_v63  ;;  %v2334_v4 = vpop.f32.mrb[34].mxu0 }
 0x250   : > { %v2335_v5 = vpop.f32.mrb[35].mxu0 }
 0x251   : > { %v1833_v8 = vadd.f32 %v2333_v3, %v1769_v2  ;;  %v2336_v9 = vadd.f32 %v2335_v5, %v2334_v4 }
 0x253   : > { %1862 = vst [vmem:[%s3093_s23] sm:$0xff] %v1833_v8  ;;  %v1836_v10 = vadd.f32 %v2336_v9, %v1772_v6 }
 0x255   : > { %1863 = vst [vmem:[%s3093_s23 + $0x8] sm:$0xff] %v1836_v10  ;;  %v2337_v12 = vpop.f32.mrb[36].mxu0 }
 0x256   : > { %v2338_v14 = vpop.f32.mrb[37].mxu0 }
 0x257   : > { %v2339_v16 = vadd.f32 %v2338_v14, %v2337_v12  ;;  %v2340_v17 = vpop.f32.mrb[38].mxu0 }
 0x258   : > { %v2341_v18 = vpop.f32.mrb[39].mxu0 }
 0x259   : > { %v1841_v20 = vadd.f32 %v2339_v16, %v1777_v15  ;;  %v2342_v21 = vadd.f32 %v2341_v18, %v2340_v17 }
 0x25a   : > { %v1919_v42 = vld [vmem:[%s3093_s23] sm:$0xff] (%p2757_p9) }
 0x25b   : > { %1864 = vst [vmem:[%s3093_s23 + $0x10] sm:$0xff] %v1841_v20  ;;  %v1844_v22 = vadd.f32 %v2342_v21, %v1780_v19  ;;  %1920 = vst [vmem:[%s1879_s14] sm:$0xff] (%p2757_p9), %v1919_v42 }
 0x25c   : > { %v1921_v43 = vld [vmem:[%s3093_s23 + $0x8] sm:$0xff] (%p2757_p9) }
 0x25d   : > { %1865 = vst [vmem:[%s3093_s23 + $0x18] sm:$0xff] %v1844_v22  ;;  %v2343_v24 = vpop.f32.mrb[40].mxu0  ;;  %1922 = vst [vmem:[%s1879_s14 + $0x10] sm:$0xff] (%p2757_p9), %v1921_v43 }
 0x25e   : > { %v2344_v26 = vpop.f32.mrb[41].mxu0 }
 0x25f   : > { %v2345_v7 = vadd.f32 %v2344_v26, %v2343_v24  ;;  %v2346_v28 = vpop.f32.mrb[42].mxu0 }
 0x260   : > { %v2347_v29 = vpop.f32.mrb[43].mxu0 }
 0x261   : > { %v1849_v31 = vadd.f32 %v2345_v7, %v1785_v27  ;;  %v2348_v32 = vadd.f32 %v2347_v29, %v2346_v28 }
 0x262   : > { %v1923_v44 = vld [vmem:[%s3093_s23 + $0x10] sm:$0xff] (%p2757_p9) }
 0x263   : > { %1866 = vst [vmem:[%s3093_s23 + $0x20] sm:$0xff] %v1849_v31  ;;  %v1852_v34 = vadd.f32 %v2348_v32, %v1788_v30  ;;  %1924 = vst [vmem:[%s1879_s14 + $0x20] sm:$0xff] (%p2757_p9), %v1923_v44 }
 0x264   : > { %v1925_v45 = vld [vmem:[%s3093_s23 + $0x18] sm:$0xff] (%p2757_p9) }
 0x265   : > { %v2349_v35 = vpop.f32.mrb[24].mxu1  ;;  %1867 = vst [vmem:[%s3093_s23 + $0x28] sm:$0xff] %v1852_v34  ;;  %1875 = sbr.rel (!%p2757_p9) target bundleno = 628 (0x274), region = 127  ;;  %1926 = vst [vmem:[%s1879_s14 + $0x30] sm:$0xff] (%p2757_p9), %v1925_v45 }
 0x266   : > { %v2350_v36 = vpop.f32.mrb[25].mxu1 }
 0x267   : > { %v2351_v38 = vadd.f32 %v2350_v36, %v2349_v35  ;;  %v2352_v39 = vpop.f32.mrb[26].mxu1 }
 0x268   : > { %v2353_v40 = vpop.f32.mrb[27].mxu1 }
 0x269   : > { %v1857_v41 = vadd.f32 %v2351_v38, %v1793_v37 }
 0x26a   : > { %v1927_v46 = vld [vmem:[%s3093_s23 + $0x20] sm:$0xff] (%p2757_p9) }
 0x26b   : > { %1868 = vst [vmem:[%s3093_s23 + $0x30] sm:$0xff] %v1857_v41  ;;  %1928 = vst [vmem:[%s1879_s14 + $0x40] sm:$0xff] (%p2757_p9), %v1927_v46 }
 0x26c   : > { %v1929_v47 = vld [vmem:[%s3093_s23 + $0x28] sm:$0xff] }
 0x26d   : > { %1930 = vst [vmem:[%s1879_s14 + $0x50] sm:$0xff] %v1929_v47 }
 0x272   : > { %v1931_v48 = vld [vmem:[%s3093_s23 + $0x30] sm:$0xff] }
 0x273   : > { %1932 = vst [vmem:[%s1879_s14 + $0x60] sm:$0xff] %v1931_v48 }
 0x274 PF: > { %s16_s29 = sadd.s32 1, %s2648_s29   ;;  %s3159_s21 = smov %s2620_s22 }
 0x275   : > { %p13_p1 = scmp.ge.s32.totalorder %s16_s29, 6   ;;  %s3160_s22 = smov %s2762_s17 }
 0x276   : > { %s3161_s23 = smov %s2628_s24  ;;  %s3162_s24 = smov %s2751_s13 }
 0x277   : > { %s3163_s25 = smov %s2640_s27  ;;  %s3164_s26 = smov %s2644_s28 }
 0x278   : > { %s3165_s27 = smov %s3168_s7  ;;  %s3166_s28 = smov %s3172_s8 }
 0x279   :  { %15 = sbr.rel (!%p13_p1) target bundleno = 7 (0x7), region = 213 }

</bundles_post_ra>
